<compile_context>
chip_gen: v5e
topology: v5e:2x2
jax: 0.10.0
libtpu: 0.0.40
codegen_flags: <defaults>
</compile_context>

<pallas_src>
from dataclasses import dataclass

import jax
import jax.numpy as jnp
from jax import lax
from jax.experimental import pallas as pl
from jax.experimental.pallas import tpu as pltpu


# ----------------------------------------------------------------------------
# Result dataclasses (JAX-array analogues of the PyTorch ones)
# ----------------------------------------------------------------------------
@dataclass
class PointCloudResult:
    xyz_batches: list   # [(n_points, 4) * B]
    rgb_batches: list   # [(n_points, 3) * B]


@dataclass
class ReferenceViewResult:
    img: object
    pretrained: dict
    backbone: dict


@dataclass
class CasMVSNetModuleResult:
    ref_view_result_list: list
    registed_pcd: PointCloudResult


# ----------------------------------------------------------------------------
# Helpers: padding, VMEM-aware tile selection
# ----------------------------------------------------------------------------
def _round_up(x, m):
    return ((x + m - 1) // m) * m


def _pad_last(x, target):
    pad = target - x.shape[-1]
    if pad == 0:
        return x
    cfg = [(0, 0)] * (x.ndim - 1) + [(0, pad)]
    return jnp.pad(x, cfg)


def _vmem_limit_bytes():
    # Generation-aware: 128 MiB on v5e/v6e, 64 MiB on v7x.
    try:
        cap = pltpu.get_tpu_info().vmem_capacity_bytes
    except Exception:
        cap = 64 * 1024 * 1024
    return min(int(cap * 0.6), 96 * 1024 * 1024)


def _cost_row_bytes(n_src, f, d, want_conf, want_prob):
    """Per-lane VMEM bytes of the fused cost kernel (double-buffered IO + live)."""
    in_b = f * 2 + n_src * (4 * f * d * 2 + 2 * d * 4)      # ref + corners + wx/wy
    out_b = 4 + (4 if want_conf else 0) + (d * 2 if want_prob else 0)
    live = 4 * f * d * 4 + 8 * d * 4                         # fsum/ssq/temps + softmax
    return 2 * in_b + 2 * out_b + live


def _choose_cost_tile(hw, n_src, f, d, vmem_limit):
    row = _cost_row_bytes(n_src, f, d, True, True)           # size for worst case
    budget = int(vmem_limit * 0.7)
    t = (budget // max(row, 1)) // 128 * 128
    t = max(128, min(t, 4096))
    t = min(t, _round_up(hw, 128))
    hwp = _round_up(hw, t)
    return t, hwp


def _pick_divisor_tile(hwp, row_bytes, budget):
    """Largest multiple-of-128 divisor of hwp whose block fits the budget."""
    best = 128
    t = 128
    while t <= hwp:
        if hwp % t == 0 and t * row_bytes <= budget:
            best = t
        t += 128
    return best


# ----------------------------------------------------------------------------
# Pallas kernel 1: inverse-depth candidate generation (preprocess hot path)
#   out[:, j] = 1 / (min_d + ((ND-1-j)/(ND-1)) * (max_d - min_d))
# which equals torch's flip(1 / (min_d + linspace(0,1,ND)*(max_d-min_d)), -1)
# ----------------------------------------------------------------------------
def _depth_candidates_kernel(min_ref, max_ref, out_ref):
    nd = out_ref.shape[1]
    j = lax.broadcasted_iota(jnp.int32, out_ref.shape, 1).astype(jnp.float32)
    t = (float(nd - 1) - j) / float(nd - 1)
    candi = min_ref[...] + t * (max_ref[...] - min_ref[...])
    out_ref[...] = 1.0 / candi


def depth_candidates(min_depth, max_depth, ndepths):
    bv = min_depth.shape[0]
    return pl.pallas_call(
        _depth_candidates_kernel,
        out_shape=jax.ShapeDtypeStruct((bv, ndepths), jnp.float32),
        grid=(1,),
        in_specs=[
            pl.BlockSpec((bv, 1), lambda i: (0, 0)),
            pl.BlockSpec((bv, 1), lambda i: (0, 0)),
        ],
        out_specs=pl.BlockSpec((bv, ndepths), lambda i: (0, 0)),
    )(min_depth.astype(jnp.float32), max_depth.astype(jnp.float32))


# ----------------------------------------------------------------------------
# Pallas kernel 2: 1x1-conv feature extraction, lane-dense layout.
#   x:   (B*V, C, HWP)  f32, pixels on lanes
#   w:   (F, C)         f32  (already pre-scaled by sqrt(w_reg))
#   b:   (F, 1)         f32
#   out: (B*V, F, HWP)  bf16 (storage dtype; math stays in f32 on the VPU)
# K=3 / F=8 would use <1% of the MXU and the op is HBM-bound, so it stays a
# VPU multiply-add over channels.
# TODO(synk): a real FeatureNet (large C) should be im2col + MXU matmul.
# ----------------------------------------------------------------------------
def _feat_conv_kernel(x_ref, w_ref, b_ref, o_ref):
    x = x_ref[0]                              # (C, T) f32
    wgt = w_ref[...]                          # (F, C)
    c_in = x.shape[0]
    acc = wgt[:, 0:1] * x[0:1, :]             # (F,1)*(1,T) -> (F, T)
    for ci in range(1, c_in):
        acc = acc + wgt[:, ci:ci + 1] * x[ci:ci + 1, :]
    o_ref[0] = jnp.maximum(acc + b_ref[...], 0.0).astype(o_ref.dtype)


def feature_conv(x, w, b, hw_tile, vmem_limit):
    bv, c, hwp = x.shape
    f = w.shape[0]
    n_t = hwp // hw_tile
    return pl.pallas_call(
        _feat_conv_kernel,
        out_shape=jax.ShapeDtypeStruct((bv, f, hwp), jnp.bfloat16),
        grid=(bv * n_t,),
        in_specs=[
            pl.BlockSpec((1, c, hw_tile), lambda g: (g // n_t, 0, g % n_t)),
            pl.BlockSpec((f, c), lambda g: (0, 0)),
            pl.BlockSpec((f, 1), lambda g: (0, 0)),
        ],
        out_specs=pl.BlockSpec((1, f, hw_tile), lambda g: (g // n_t, 0, g % n_t)),
        compiler_params=pltpu.CompilerParams(
            dimension_semantics=("parallel",),
            vmem_limit_bytes=vmem_limit),
    )(x.astype(jnp.float32), w.astype(jnp.float32), b.astype(jnp.float32))


# ----------------------------------------------------------------------------
# Pallas kernel 3 (fused): bilinear blend of warped source features + variance
# cost + softmax depth regression + (optional) confidence / prob volume.
#
# Per source view the wrapper passes the FOUR bf16 corner gathers
# (B, F, D, HWP) plus blend weights wx, wy (B, D, HWP); the blend, per-feature
# mean/variance over views, F-reduction (plain VPU sum — features are
# pre-scaled by sqrt(w_reg)) and softmax all happen in VMEM, so the warped
# volume never touches HBM.
#
# TODO(synk): the remaining corner gathers are XLA gathers in the wrapper; a
# full in-kernel gather from a VMEM-resident feature map would cut another
# ~D-fold of HBM traffic but has no robust Pallas TPU lowering today.
# TODO(synk): real CasMVSNet runs a 3D U-Net here; a 1x1x1 feature-weighted
# variance (weights folded into the feature conv) is used instead.
# ----------------------------------------------------------------------------
def _make_cost_kernel(n_src, want_conf, want_prob):
    inv_v = 1.0 / float(n_src + 1)

    def kernel(*refs):
        ref_ref = refs[0]
        dvals_ref = refs[1]
        src = refs[2:2 + 6 * n_src]
        outs = refs[2 + 6 * n_src:]
        depth_ref = outs[0]
        oi = 1
        conf_ref = None
        prob_ref = None
        if want_conf:
            conf_ref = outs[oi]
            oi += 1
        if want_prob:
            prob_ref = outs[oi]

        r = ref_ref[0].astype(jnp.float32)                 # (F, T)
        fsum = None
        ssq = None
        for vi in range(n_src):
            base = 6 * vi
            wx = src[base + 4][0][None, :, :]              # (1, D, T)
            wy = src[base + 5][0][None, :, :]
            w00 = (1.0 - wx) * (1.0 - wy)
            w01 = wx * (1.0 - wy)
            w10 = (1.0 - wx) * wy
            w11 = wx * wy
            s = src[base + 0][0].astype(jnp.float32) * w00  # (F, D, T)
            s = s + src[base + 1][0].astype(jnp.float32) * w01
            s = s + src[base + 2][0].astype(jnp.float32) * w10
            s = s + src[base + 3][0].astype(jnp.float32) * w11
            if fsum is None:
                fsum = s
                ssq = s * s
            else:
                fsum = fsum + s
                ssq = ssq + s * s

        # reference view contributes identically to every depth hypothesis
        r3 = r[:, None, :]                                  # (F, 1, T)
        fsum = fsum + r3
        ssq = ssq + r3 * r3

        mean = fsum * inv_v
        # plain sum over F == sum_f w_reg[f] * var_f (sqrt(w_reg) folded into conv)
        cost = jnp.sum(ssq * inv_v - mean * mean, axis=0)   # (D, T)
        cost = jnp.maximum(cost, 0.0)

        logits = -cost
        m = jnp.max(logits, axis=0, keepdims=True)          # (1, T)
        e = jnp.exp(logits - m)
        denom = jnp.sum(e, axis=0, keepdims=True)
        prob = e * (1.0 / denom)                            # exact division

        dv = dvals_ref[0]                                   # (D, 1)
        depth_ref[0] = jnp.sum(prob * dv, axis=0, keepdims=True)
        if want_conf:
            # TODO(synk): real photometric confidence sums prob over a
            # 4-neighbourhood around the regressed depth index.
            conf_ref[0] = jnp.max(prob, axis=0, keepdims=True)
        if want_prob:
            prob_ref[0] = prob.astype(prob_ref.dtype)

    return kernel


def cost_volume_depth(ref_feat, src_views, dvals, *, want_conf, want_prob,
                      hw_tile, hw, h, w, vmem_limit):
    """ref_feat (B,F,HWP) bf16; src_views = [(c00,c01,c10,c11,wx,wy)*n_src]."""
    b, f, hwp = ref_feat.shape
    d = dvals.shape[1]
    n_src = len(src_views)
    n_t = hwp // hw_tile

    ref_map = lambda g: (g // n_t, 0, g % n_t)
    dval_map = lambda g: (g // n_t, 0, 0)
    corner_map = lambda g: (g // n_t, 0, 0, g % n_t)
    dxw_map = lambda g: (g // n_t, 0, g % n_t)

    in_specs = [pl.BlockSpec((1, f, hw_tile), ref_map),
                pl.BlockSpec((1, d, 1), dval_map)]
    args = [ref_feat, dvals.astype(jnp.float32)]
    for (c00, c01, c10, c11, wx, wy) in src_views:
        for c in (c00, c01, c10, c11):
            in_specs.append(pl.BlockSpec((1, f, d, hw_tile), corner_map))
            args.append(c)
        for wv in (wx, wy):
            in_specs.append(pl.BlockSpec((1, d, hw_tile), dxw_map))
            args.append(wv)

    out_shape = [jax.ShapeDtypeStruct((b, 1, hwp), jnp.float32)]
    out_specs = [pl.BlockSpec((1, 1, hw_tile), dxw_map)]
    if want_conf:
        out_shape.append(jax.ShapeDtypeStruct((b, 1, hwp), jnp.float32))
        out_specs.append(pl.BlockSpec((1, 1, hw_tile), dxw_map))
    if want_prob:
        out_shape.append(jax.ShapeDtypeStruct((b, d, hwp), jnp.bfloat16))
        out_specs.append(pl.BlockSpec((1, d, hw_tile), dxw_map))

    outs = pl.pallas_call(
        _make_cost_kernel(n_src, want_conf, want_prob),
        out_shape=tuple(out_shape),
        grid=(b * n_t,),
        in_specs=in_specs,
        out_specs=tuple(out_specs),
        compiler_params=pltpu.CompilerParams(
            dimension_semantics=("parallel",),
            vmem_limit_bytes=vmem_limit),
    )(*args)

    result = {'depth': outs[0][:, 0, :hw].reshape(b, h, w)}
    oi = 1
    if want_conf:
        result['photometric_confidence'] = outs[oi][:, 0, :hw].reshape(b, h, w)
        oi += 1
    if want_prob:
        result['prob_volume'] = outs[oi][:, :, :hw].reshape(b, d, h, w)
    return result


# ----------------------------------------------------------------------------
# Pallas kernel 4: per-pixel unprojection to homogeneous world coordinates,
# lane-dense (pixels on lanes), four direct row stores per step.
#   X_cam = depth * K^{-1} @ [u, v, 1] ;  X_world = c2w @ [X_cam; 1]
# ----------------------------------------------------------------------------
def unproject_points(inv_K, c2w, depth_all, hwp, hw_tile, vmem_limit):
    b, v, h, w = depth_all.shape
    hw = h * w
    n_t = hwp // hw_tile
    invk_flat = inv_K.reshape(-1).astype(jnp.float32)     # (B*V*9,)  SMEM
    c2w_flat = c2w.reshape(-1).astype(jnp.float32)        # (B*V*16,) SMEM
    depth_flat = _pad_last(depth_all.reshape(b, v, 1, hw), hwp).astype(jnp.float32)
    # pixel-coordinate grid built once in the wrapper (avoids per-step iota /
    # integer div-mod inside the kernel)
    uv = jnp.stack([
        jnp.tile(jnp.arange(w, dtype=jnp.float32), h),        # u = idx % w
        jnp.repeat(jnp.arange(h, dtype=jnp.float32), w),      # v = idx // w
    ], axis=0)                                                 # (2, HW)
    uv = _pad_last(uv, hwp)

    def kernel(invk_ref, c2w_ref, uv_ref, depth_ref, xyz_ref):
        g = pl.program_id(0)
        vi = (g // n_t) % v
        bi = g // (n_t * v)
        dpt = depth_ref[0, 0]                                  # (1, T)
        uvv = uv_ref[...]
        u = uvv[0:1, :]
        vv = uvv[1:2, :]
        kb = (bi * v + vi) * 9
        k = [invk_ref[kb + i] for i in range(9)]
        xc = (k[0] * u + k[1] * vv + k[2]) * dpt
        yc = (k[3] * u + k[4] * vv + k[5]) * dpt
        zc = (k[6] * u + k[7] * vv + k[8]) * dpt
        cb = (bi * v + vi) * 16
        m = [c2w_ref[cb + i] for i in range(16)]
        xyz_ref[0, 0, 0:1, :] = m[0] * xc + m[1] * yc + m[2] * zc + m[3]
        xyz_ref[0, 0, 1:2, :] = m[4] * xc + m[5] * yc + m[6] * zc + m[7]
        xyz_ref[0, 0, 2:3, :] = m[8] * xc + m[9] * yc + m[10] * zc + m[11]
        xyz_ref[0, 0, 3:4, :] = jnp.ones_like(xc)

    out = pl.pallas_call(
        kernel,
        out_shape=jax.ShapeDtypeStruct((b, v, 4, hwp), jnp.float32),
        grid=(b * v * n_t,),
        in_specs=[
            pl.BlockSpec(memory_space=pltpu.MemorySpace.SMEM),
            pl.BlockSpec(memory_space=pltpu.MemorySpace.SMEM),
            pl.BlockSpec((2, hw_tile), lambda g: (0, g % n_t)),
            pl.BlockSpec((1, 1, 1, hw_tile),
                         lambda g: (g // (v * n_t), (g // n_t) % v, 0, g % n_t)),
        ],
        out_specs=pl.BlockSpec((1, 1, 4, hw_tile),
                               lambda g: (g // (v * n_t), (g // n_t) % v, 0, g % n_t)),
        compiler_params=pltpu.CompilerParams(
            dimension_semantics=("parallel",),
            vmem_limit_bytes=vmem_limit),
    )(invk_flat, c2w_flat, uv, depth_flat)
    return out[..., :hw].reshape(b, v, 4, h, w)


# ----------------------------------------------------------------------------
# Plain-JAX glue: homography warp geometry + corner gathers
# ----------------------------------------------------------------------------
def build_proj(proj_stage):
    # proj_stage: [B, V, 2, 4, 4] -> full projection P = K4 @ E : [B, V, 4, 4]
    E = proj_stage[:, :, 0]
    K4 = proj_stage[:, :, 1].at[..., 3, 3].set(1.0)
    return jnp.einsum('bvij,bvjk->bvik', K4, E)


def compute_warp_geometry(P_src, P_ref, depth_values, h, w, hwp):
    """Warp geometry (shared by pretrained & backbone passes): flat indices for
    the four bilinear corners and wx/wy weights, each padded to HWP.
    TODO(synk): the real MVSNet zero-pads out-of-view samples; border-clamp
    is used here."""
    hw = h * w
    trans = jnp.einsum('bij,bjk->bik', P_src, jnp.linalg.inv(P_ref))
    yy, xx = jnp.meshgrid(jnp.arange(h, dtype=jnp.float32),
                          jnp.arange(w, dtype=jnp.float32), indexing='ij')
    pix = jnp.stack([xx, yy, jnp.ones_like(xx)], axis=0).reshape(3, hw)
    rot = trans[:, :3, :3]
    tvec = trans[:, :3, 3:]
    rot_pix = jnp.einsum('bij,jp->bip', rot, pix)                   # [B,3,HW]
    pts = rot_pix[:, None] * depth_values[:, :, None, None] + tvec[:, None]
    z = pts[:, :, 2]
    z = jnp.where(jnp.abs(z) < 1e-6, 1e-6, z)
    xs = jnp.clip(pts[:, :, 0] / z, 0.0, w - 1.0)
    ys = jnp.clip(pts[:, :, 1] / z, 0.0, h - 1.0)
    x0 = jnp.floor(xs); y0 = jnp.floor(ys)
    x1 = jnp.minimum(x0 + 1.0, w - 1.0); y1 = jnp.minimum(y0 + 1.0, h - 1.0)
    wx = xs - x0; wy = ys - y0

    def fidx(ix, iy):
        return (iy * w + ix).astype(jnp.int32)

    idxs = tuple(_pad_last(fidx(ix, iy), hwp)
                 for ix, iy in ((x0, y0), (x1, y0), (x0, y1), (x1, y1)))
    return idxs, _pad_last(wx, hwp).astype(jnp.float32), \
        _pad_last(wy, hwp).astype(jnp.float32)


def gather_corners(feat, idx):
    # feat (B, F, HWP) bf16, idx (B, D, HWP) int32 -> (B, F, D, HWP) bf16
    return jax.vmap(lambda fm, im: fm[:, im])(feat, idx)


# ----------------------------------------------------------------------------
# Simplified CascadeMVSNet feature extraction (synthetic 1x1 conv weights;
# sqrt(w_reg) folded into the conv so the cost kernel does a plain F sum).
# ----------------------------------------------------------------------------
def extract_features(params, imgs, hwp, hw_tile, vmem_limit):
    # TODO(synk): full FeatureNet pyramid is external to the given module; a
    # single 1x1 conv + ReLU with deterministic synthetic weights is used.
    b, v, c, h, w = imgs.shape
    x = _pad_last(imgs.reshape(b * v, c, h * w), hwp)
    s = jnp.sqrt(params['w_reg']).reshape(-1, 1)           # (F,1), strictly > 0
    feats = feature_conv(x, s * params['w_feat'], s * params['b_feat'],
                         hw_tile, vmem_limit)              # (BV, F, HWP) bf16
    return feats.reshape(b, v, -1, hwp)


# ----------------------------------------------------------------------------
# Point-cloud generation from per-view depth maps
# ----------------------------------------------------------------------------
def generate_point_cloud_from_depth_maps(imgs, extrinsics, intrinsics,
                                         depths_est, confidences,
                                         hwp, hw_tile, vmem_limit):
    # TODO(synk): the real function filters points by photometric confidence /
    # geometric consistency (data-dependent point counts); all pixels kept.
    del confidences
    b, v, c, h, w = imgs.shape
    depth_all = jnp.stack(depths_est, axis=1)              # [B,V,H,W]
    inv_K = jnp.linalg.inv(intrinsics)                     # [B,V,3,3]
    c2w = jnp.linalg.inv(extrinsics)                       # [B,V,4,4]
    xyz = unproject_points(inv_K, c2w, depth_all, hwp, hw_tile, vmem_limit)
    xyz_batches = [jnp.transpose(xyz[bi], (0, 2, 3, 1)).reshape(-1, 4)
                   for bi in range(b)]
    rgb_batches = [jnp.transpose(imgs[bi], (0, 2, 3, 1)).reshape(-1, 3)
                   for bi in range(b)]
    return xyz_batches, rgb_batches


# ----------------------------------------------------------------------------
# CasMVSNetModule (JAX / Pallas)
# ----------------------------------------------------------------------------
class CasMVSNetModuleJax:
    def __init__(self, ndepths=(48, 32, 8), use_backbone=True,
                 load_to_backbone=False, in_channels=3, feat_channels=8):
        del ndepths
        self.use_backbone = use_backbone
        self.in_channels = in_channels
        self.feat_channels = feat_channels

        def init_params(seed):
            kw, kb, kr = jax.random.split(jax.random.PRNGKey(seed), 3)
            return {
                'w_feat': 0.5 * jax.random.normal(
                    kw, (feat_channels, in_channels), jnp.float32),
                'b_feat': 0.1 * jax.random.normal(
                    kb, (feat_channels, 1), jnp.float32),
                'w_reg': jnp.abs(jax.random.normal(
                    kr, (feat_channels,), jnp.float32)) + 0.1,
            }

        # synthetic deterministic "checkpoint" (no .pt loading)
        self.pretrained_params = init_params(1)
        self.backbone_params = (self.pretrained_params
                                if (use_backbone and load_to_backbone)
                                else init_params(2))

    def preprocess(self, imgs, extrinsics, intrinsics, nears, fars, ndepths=192):
        b, v, c, h, w = imgs.shape
        cloned = intrinsics.at[..., :2, :].set(intrinsics[..., :2, :] / 4.0)
        proj = jnp.zeros((b, v, 2, 4, 4), jnp.float32)
        proj = proj.at[..., 0, :, :].set(extrinsics)
        proj = proj.at[..., 1, :3, :3].set(cloned)
        stage2 = proj.at[..., 1, :2, :].set(proj[..., 1, :2, :] * 2.0)
        stage3 = proj.at[..., 1, :2, :].set(proj[..., 1, :2, :] * 4.0)
        proj_mat = {'stage1': proj, 'stage2': stage2, 'stage3': stage3}

        min_depth = (1.0 / fars).reshape(b * v, 1)
        max_depth = (1.0 / nears).reshape(b * v, 1)
        depth_values = depth_candidates(min_depth, max_depth, ndepths)  # flipped
        depth_values = depth_values.reshape(b, v, ndepths)
        return proj_mat, depth_values

    def forward(self, imgs, extrinsics, intrinsics, nears, fars, ndepths=128):
        proj_mat, depth_values = self.preprocess(
            imgs, extrinsics, intrinsics, nears, fars, ndepths)
        b, v, c, h, w = imgs.shape
        hw = h * w
        f = self.feat_channels
        n_src = v - 1
        vmem_limit = _vmem_limit_bytes()
        budget = int(vmem_limit * 0.7)

        # one shared padded-HW length; all kernel tiles divide it
        hw_tile, hwp = _choose_cost_tile(hw, n_src, f, ndepths, vmem_limit)
        feat_tile = _pick_divisor_tile(hwp, (c * 4 + f * 2) * 2 + (c + f) * 4, budget)
        unproj_tile = _pick_divisor_tile(hwp, 128, budget)

        result = CasMVSNetModuleResult(ref_view_result_list=[],
                                       registed_pcd=PointCloudResult([], []))

        # features of rolled images are just rolled features -> extract once
        # per parameter set and re-index with the per-iteration view order.
        # TODO(synk): the 3-stage cascade (ndepths 48/32/8) + 3D U-Net is
        # external to the given module; a single full-resolution stage is run.
        P = build_proj(proj_mat['stage3'])                       # [B,V,4,4]
        feats_pre = extract_features(self.pretrained_params, imgs, hwp,
                                     feat_tile, vmem_limit)
        feats_bb = (extract_features(self.backbone_params, imgs, hwp,
                                     feat_tile, vmem_limit)
                    if self.use_backbone else None)

        pretrained_depths_est = []
        pretrained_photometric_confidences = []
        for vi in range(v):
            order = [(vi + k) % v for k in range(v)]             # rolled order
            src_ids = order[1:]
            dv = depth_values[:, vi, :]                          # (B, D)
            dvals = dv.reshape(b, ndepths, 1)
            # warp geometry shared by the pretrained and backbone passes
            geoms = [compute_warp_geometry(P[:, sv], P[:, vi], dv, h, w, hwp)
                     for sv in src_ids]

            def build_views(feats):
                views = []
                for sv, (idxs, wx, wy) in zip(src_ids, geoms):
                    fsv = feats[:, sv]                           # (B, F, HWP)
                    c00, c01, c10, c11 = [gather_corners(fsv, ii) for ii in idxs]
                    views.append((c00, c01, c10, c11, wx, wy))
                return views

            pretrained_outputs = cost_volume_depth(
                feats_pre[:, vi], build_views(feats_pre), dvals,
                want_conf=True, want_prob=not self.use_backbone,
                hw_tile=hw_tile, hw=hw, h=h, w=w, vmem_limit=vmem_limit)
            pretrained_depths_est.append(pretrained_outputs['depth'])
            pretrained_photometric_confidences.append(
                pretrained_outputs['photometric_confidence'])

            if self.use_backbone:
                backbone_outputs = cost_volume_depth(
                    feats_bb[:, vi], build_views(feats_bb), dvals,
                    want_conf=False, want_prob=True,
                    hw_tile=hw_tile, hw=hw, h=h, w=w, vmem_limit=vmem_limit)
            else:
                backbone_outputs = pretrained_outputs
            # NOTE: the original indexes the (already vi-times rolled) imgs,
            # i.e. original view (2*vi) % v.
            result.ref_view_result_list.append(
                ReferenceViewResult(imgs[:, (2 * vi) % v],
                                    pretrained_outputs, backbone_outputs))

        # after V rolls the original imgs tensor is restored -> pass imgs.
        vertices, vertices_color = generate_point_cloud_from_depth_maps(
            imgs, extrinsics, intrinsics,
            pretrained_depths_est, pretrained_photometric_confidences,
            hwp, unproj_tile, vmem_limit)
        result.registed_pcd = PointCloudResult(xyz_batches=vertices,
                                               rgb_batches=vertices_color)
        return result


# ----------------------------------------------------------------------------
if __name__ == "__main__":
    key = jax.random.PRNGKey(0)
    b, v, c, h, w = 2, 3, 3, 16, 16
    ndepths = 32

    imgs = jax.random.uniform(key, (b, v, c, h, w), dtype=jnp.float32)

    intr = jnp.array([[20.0, 0.0, 8.0],
                      [0.0, 20.0, 8.0],
                      [0.0, 0.0, 1.0]], jnp.float32)
    intrinsics = jnp.broadcast_to(intr, (b, v, 3, 3))

    def make_extrinsic(angle, tx):
        ca, sa = jnp.cos(angle), jnp.sin(angle)
        R = jnp.array([[ca, 0.0, sa],
                       [0.0, 1.0, 0.0],
                       [-sa, 0.0, ca]], jnp.float32)
        t = jnp.array([tx, 0.0, 1.0], jnp.float32)
        return jnp.eye(4, dtype=jnp.float32).at[:3, :3].set(R).at[:3, 3].set(t)

    extrinsics = jnp.stack([
        jnp.stack([make_extrinsic(0.05 * vi + 0.01 * bi, 0.1 * vi)
                   for vi in range(v)])
        for bi in range(b)])                                   # [b, v, 4, 4]

    nears = jnp.full((b, v), 2.0, jnp.float32)
    fars = jnp.full((b, v), 10.0, jnp.float32)

    module = CasMVSNetModuleJax(use_backbone=True)
    result = module.forward(imgs, extrinsics, intrinsics, nears, fars,
                            ndepths=ndepths)

    for arr in result.registed_pcd.xyz_batches + result.registed_pcd.rgb_batches:
        jax.block_until_ready(arr)
    jax.block_until_ready(result.ref_view_result_list[0].pretrained['depth'])
    jax.block_until_ready(
        result.ref_view_result_list[0].pretrained['photometric_confidence'])
    jax.block_until_ready(result.ref_view_result_list[0].backbone['prob_volume'])
    print("KERNEL_OK")
</pallas_src>

<mosaic_0001>
module attributes {stable_mosaic.version = 11 : i64} {
  func.func @_depth_candidates_kernel(%arg0: i32, %arg1: memref<6x1xf32, #tpu.memory_space<vmem>>, %arg2: memref<6x1xf32, #tpu.memory_space<vmem>>, %arg3: memref<6x32xf32, #tpu.memory_space<vmem>>) attributes {dimension_semantics = [#tpu.dimension_semantics<arbitrary>], iteration_bounds = array<i64: 1>, scalar_prefetch = 0 : i64, scratch_operands = 0 : i64, tpu.core_type = #tpu.core_type<tc>, window_params = [{pipeline_mode = #tpu.pipeline_mode<synchronous>, transform_indices = @transform_0, window_bounds = array<i64: 6, 1>}, {pipeline_mode = #tpu.pipeline_mode<synchronous>, transform_indices = @transform_1, window_bounds = array<i64: 6, 1>}, {pipeline_mode = #tpu.pipeline_mode<synchronous>, transform_indices = @transform_2, window_bounds = array<i64: 6, 32>}]} {
    %0 = tpu.iota {dimensions = array<i32: 1>} : vector<6x32xi32>
    %1 = arith.sitofp %0 : vector<6x32xi32> to vector<6x32xf32>
    %cst = arith.constant 3.100000e+01 : f32
    %2 = vector.broadcast %cst : f32 to vector<6x32xf32>
    %3 = arith.subf %2, %1 : vector<6x32xf32>
    %cst_0 = arith.constant 3.100000e+01 : f32
    %4 = vector.broadcast %cst_0 : f32 to vector<6x32xf32>
    %5 = arith.divf %3, %4 : vector<6x32xf32>
    %c0 = arith.constant 0 : index
    %c0_1 = arith.constant 0 : index
    %6 = vector.load %arg1[%c0, %c0_1] : memref<6x1xf32, #tpu.memory_space<vmem>>, vector<6x1xf32>
    %c0_2 = arith.constant 0 : index
    %c0_3 = arith.constant 0 : index
    %7 = vector.load %arg2[%c0_2, %c0_3] : memref<6x1xf32, #tpu.memory_space<vmem>>, vector<6x1xf32>
    %c0_4 = arith.constant 0 : index
    %c0_5 = arith.constant 0 : index
    %8 = vector.load %arg1[%c0_4, %c0_5] : memref<6x1xf32, #tpu.memory_space<vmem>>, vector<6x1xf32>
    %9 = arith.subf %7, %8 : vector<6x1xf32>
    %10 = vector.broadcast %9 : vector<6x1xf32> to vector<6x32xf32>
    %11 = arith.mulf %5, %10 : vector<6x32xf32>
    %12 = vector.broadcast %6 : vector<6x1xf32> to vector<6x32xf32>
    %13 = arith.addf %12, %11 : vector<6x32xf32>
    %cst_6 = arith.constant 1.000000e+00 : f32
    %14 = vector.broadcast %cst_6 : f32 to vector<6x32xf32>
    %15 = arith.divf %14, %13 : vector<6x32xf32>
    %c0_7 = arith.constant 0 : index
    %c0_8 = arith.constant 0 : index
    %16 = vector.load %arg3[%c0_7, %c0_8] : memref<6x32xf32, #tpu.memory_space<vmem>>, vector<6x32xf32>
    tpu.vector_store %arg3[%c0_7, %c0_8], %15 {strides = array<i32>} : memref<6x32xf32, #tpu.memory_space<vmem>>, vector<6x32xf32>,
    return
  }
  func.func @transform_0(%arg0: i32) -> (i32, i32) {
    %c0_i32 = arith.constant 0 : i32
    %c0_i32_0 = arith.constant 0 : i32
    %c0_i32_1 = arith.constant 0 : i32
    return %c0_i32, %c0_i32_0 : i32, i32
  }
  func.func @transform_1(%arg0: i32) -> (i32, i32) {
    %c0_i32 = arith.constant 0 : i32
    %c0_i32_0 = arith.constant 0 : i32
    %c0_i32_1 = arith.constant 0 : i32
    return %c0_i32, %c0_i32_0 : i32, i32
  }
  func.func @transform_2(%arg0: i32) -> (i32, i32) {
    %c0_i32 = arith.constant 0 : i32
    %c0_i32_0 = arith.constant 0 : i32
    %c0_i32_1 = arith.constant 0 : i32
    return %c0_i32, %c0_i32_0 : i32, i32
  }
}

</mosaic_0001>

<bundles_post_ra>
// kernel: tpu_custom_call.1
= control target key start
LH: loop header
LB: loop body
LE: loop exit
PB: predicated region body
PF: predicated region fallthrough
CT: control target
= control target key end

     0   :  { %v106_v2 = vmov 0   ;;  %s133_s0 = inlined_call_operand.vmem [shape: f32[6,1], index: 0, kind: input, shape index: {}]   ;;  %s134_s1 = inlined_call_operand.vmem [shape: f32[6,1], index: 1, kind: input, shape index: {}]   ;;  %s135_s2 = inlined_call_operand.hbm [shape: f32[6,32], index: 2, kind: output, shape index: {}]  }
   0x1   :  { %v24_v0 = vld [vmem:[%s133_s0] sm:$0x3f]  ;;  %75 = vset.pattern.permute.xlu0 %v106_v2 }
   0x2   :  { %v25_v1 = vld [vmem:[%s134_s1] sm:$0x3f] }
   0x3   :  { %v26_v3 = vsub.f32 %v25_v1, %v24_v0 }
   0x4   :  { %7 = vsyncpa [#allocation3], 0  ;;  %v107_v4 = vmov 31.0   ;;  %v12_v7 = vlaneseq  ;;  %s108_s0 = smov [#allocation2]   ;;  %s63_s15 = sshll.u32 %s135_s2, 4  ;;  %vm54_vm4 = vcmask 259072   ;;  %s64_s15 = int_to_ptr.hbm [resolvable:$true] %s63_s15 }
   0x5   :  { %29 = vperm.xlu0 %75, %v26_v3   ;;  %76 = vrcp.f32 %v107_v4  ;;  %s61_s1 = sshll.u32 %s108_s0, 4  ;;  %s62_s1 = int_to_ptr.vmem [resolvable:$true] %s61_s1 }
   0x6   :  { %v13_v9 = vand.u32 127, %v12_v7 }
   0x8   :  { %v14_v11 = vcvt.s32.f32 %v13_v9 }
   0xa   :  { %v15_v13 = vsub.f32 31.0, %v14_v11 }
   0xb   :  { %v77_v5 = vpop.eup %76 }
   0xc   :  { %v17_v6 = vmul.f32 31.0, %v77_v5  ;;  %vm21_vm0 = vweird.f32 %v77_v5 }
   0xd   :  { %35 = vperm.xlu0 %75, %v24_v0  }
   0xe   :  { %v18_v8 = vsub.f32 1.0, %v17_v6 }
  0x10   :  { %v19_v10 = vmul.f32 %v77_v5, %v18_v8 }
  0x12   :  { %v20_v12 = vadd.f32 %v77_v5, %v19_v10 }
  0x14   :  { %v22_v15 = vsel %vm21_vm0, %v77_v5, %v20_v12 }
  0x15   :  { %v23_v16 = vmul.f32 %v22_v15, %v15_v13 }
  0x77   :  { %v30_v14 = vpop.permute.xlu0 %29 }
  0x78   :  { %v32_v17 = vmul.f32 %v30_v14, %v23_v16 }
  0x7f   :  { %v36_v18 = vpop.permute.xlu0 %35 }
  0x80   :  { %v38_v19 = vadd.f32 %v36_v18, %v32_v17 }
  0x82   :  { %78 = vrcp.f32 %v38_v19  ;;  %v50_v23 = vand.u32 2147483648, %v38_v19  ;;  %v48_v25 = vand.u32 2147483647, %v38_v19  ;;  %vm44_vm2 = vweird.f32 %v38_v19 }
  0x84   :  { %v51_v27 = vor.u32 1.1754944e-38, %v50_v23  ;;  %vm49_vm5 = vcmp.eq.f32.partialorder %v48_v25, 8.507059e+37 }
  0x88   :  { %v79_v20 = vpop.eup %78 }
  0x89   :  { %v40_v21 = vmul.f32 %v79_v20, %v38_v19  ;;  %vm45_vm1 = vweird.f32 %v79_v20 }
  0x8a   :  { %vm46_vm3 = vmor %vm44_vm2, %vm45_vm1 }
  0x8b   :  { %v41_v22 = vsub.f32 1.0, %v40_v21 }
  0x8d   :  { %v42_v24 = vmul.f32 %v79_v20, %v41_v22 }
  0x8f   :  { %v43_v26 = vadd.f32 %v79_v20, %v42_v24 }
  0x91   :  { %v47_v28 = vsel %vm46_vm3, %v79_v20, %v43_v26 }
  0x92   :  { %v52_v29 = vsel %vm49_vm5, %v51_v27, %v47_v28 }
  0x93   :  { %55 = vst.msk [vmem:[#allocation2] sm:$0x3f] %vm54_vm4, %v52_v29 }
  0x94   :  { %66 = dma.vmem_to_hbm [thread:$0]  %s62_s1, 128, %s64_s15, [#allocation3]  }
  0x95   :  { %104 = dma.done.wait [#allocation3], 128  }
  0x96   :  { %105 = vsyncadd [#allocation3], 4294967168 }
  0x97   :  { %71 = vsyncpa [#allocation3], 1 }

</bundles_post_ra>
